<compile_context>
chip_gen: v6e
topology: v6e:2x2x1
jax: 0.10.0
libtpu: 0.0.40
codegen_flags: <defaults>
</compile_context>

<pallas_src>
import jax
import jax.numpy as jnp
from jax.experimental import pallas as pl
from jax.experimental.pallas import tpu as pltpu


def mask_head_kernel(x_ref, m_ref, w1m_ref, w2_ref, pack_ref, out_ref):
    f32 = jnp.float32

    pack = pack_ref[...]                 # (8, 128) packed small params
    w1x = pack[0:1, :]                   # (1, 128) fc1 weight row for scalar x
    b1 = pack[1:2, :]                    # (1, 128) fc1 bias
    b2 = pack[2:3, :]                    # (1, 128) fc2 bias
    w3r = pack[3:4, :]                   # (1, 128) fc3 weights as a row
    b3 = pack[4:5, 0:1]                  # (1, 1)   fc3 bias

    x = x_ref[...]                       # (tb, 1)
    m = m_ref[...]                       # (tb, num_segments)

    # fc1 applied to concat([x, mask]) without any lane concat:
    #   cat(x, m) @ W1 == x * W1_row_x + m @ W1_rows_mask      (exact)
    h1 = jnp.maximum(
        x * w1x
        + jnp.dot(m, w1m_ref[...], preferred_element_type=f32)
        + b1, 0.0)

    # fc2 + ReLU on the MXU
    h2 = jnp.maximum(
        jnp.dot(h1, w2_ref[...], preferred_element_type=f32) + b2, 0.0)

    # fc3 + Tanh on VPU (mul) + XLU (lane reduce) + EUP (tanh) -> no MXU work
    y = jnp.tanh(jnp.sum(h2 * w3r, axis=-1, keepdims=True) + b3)   # (tb, 1)

    out_ref[...] = y.astype(out_ref.dtype)


def init_params(key, num_segments=10, hidden=128):
    """PyTorch-style uniform(-1/sqrt(fan_in), 1/sqrt(fan_in)) init, pre-packed
    into the kernel layout (weights stored as (in, out))."""
    d_in = 1 + num_segments
    ks = jax.random.split(key, 6)

    def lin(kw, kb, fan_in, fan_out):
        bound = fan_in ** -0.5
        w = jax.random.uniform(kw, (fan_in, fan_out), jnp.float32, -bound, bound)
        b = jax.random.uniform(kb, (fan_out,), jnp.float32, -bound, bound)
        return w, b

    w1_full, b1 = lin(ks[0], ks[1], d_in, hidden)     # rows: [x ; mask...]
    w2, b2 = lin(ks[2], ks[3], hidden, hidden)
    w3_col, b3 = lin(ks[4], ks[5], hidden, 1)         # (128, 1), (1,)

    w1m = w1_full[1:]                                  # (num_segments, 128)
    w1x = w1_full[0:1]                                 # (1, 128)
    w3_row = w3_col.T                                  # (1, 128)
    b3_row = jnp.full((1, hidden), b3[0], jnp.float32)

    # single sublane-aligned (8, 128) tile holding every small parameter
    pack = jnp.concatenate(
        [w1x, b1[None, :], b2[None, :], w3_row, b3_row,
         jnp.zeros((3, hidden), jnp.float32)], axis=0)

    return {
        "w1m": w1m, "w2": w2, "pack": pack,
        # un-packed copies for the pure-JAX reference
        "_w1_full": w1_full, "_b1": b1, "_b2": b2, "_w3": w3_col, "_b3": b3,
    }


@jax.jit
def mask_head_forward(x, mask_encoding, params):
    B = x.shape[0]
    ns = mask_encoding.shape[1]
    w1m, w2, pack = params["w1m"], params["w2"], params["pack"]
    H = w2.shape[0]          # 128

    # Batch tiling: one block for B <= 2048 (overhead-bound regime, no
    # padding); 2048-row blocks otherwise (>= 2 "parallel" blocks for v7x's
    # two TensorCores, ~6 MiB of double-buffered VMEM per block -> fits the
    # 32 MiB scoped default on every generation).
    TB = 2048
    if B <= TB:
        tb, B_pad = B, B
    else:
        tb = TB
        B_pad = pl.cdiv(B, tb) * tb
    if B_pad != B:
        pad = B_pad - B
        x = jnp.pad(x, ((0, pad), (0, 0)))
        mask_encoding = jnp.pad(mask_encoding, ((0, pad), (0, 0)))

    grid = (B_pad // tb,)

    out = pl.pallas_call(
        mask_head_kernel,
        grid=grid,
        in_specs=[
            pl.BlockSpec((tb, 1), lambda i: (i, 0)),        # x
            pl.BlockSpec((tb, ns), lambda i: (i, 0)),       # mask_encoding
            pl.BlockSpec((ns, H), lambda i: (0, 0)),        # w1 mask rows
            pl.BlockSpec((H, H), lambda i: (0, 0)),         # w2
            pl.BlockSpec((8, H), lambda i: (0, 0)),         # packed small params
        ],
        out_specs=pl.BlockSpec((tb, 1), lambda i: (i, 0)),
        out_shape=jax.ShapeDtypeStruct((B_pad, 1), jnp.float32),
        compiler_params=pltpu.CompilerParams(
            dimension_semantics=("parallel",)),
    )(x, mask_encoding, w1m, w2, pack)

    return out if B_pad == B else out[:B]


def mask_head_ref(x, mask_encoding, params):
    """Plain-JAX reference mirroring the PyTorch module."""
    hi = jax.lax.Precision.HIGHEST
    xc = jnp.concatenate([x, mask_encoding], axis=1)
    h1 = jax.nn.relu(jnp.dot(xc, params["_w1_full"], precision=hi) + params["_b1"])
    h2 = jax.nn.relu(jnp.dot(h1, params["w2"], precision=hi) + params["_b2"])
    return jnp.tanh(jnp.dot(h2, params["_w3"], precision=hi) + params["_b3"])


if __name__ == "__main__":
    num_segments = 10
    key = jax.random.PRNGKey(0)
    kx, km, kp = jax.random.split(key, 3)
    params = init_params(kp, num_segments=num_segments)

    # small-B path: single block, no padding
    B = 16
    x = jax.random.normal(kx, (B, 1), jnp.float32)
    mask_encoding = jax.random.normal(km, (B, num_segments), jnp.float32)
    out = mask_head_forward(x, mask_encoding, params)
    jax.block_until_ready(out)
    out_ref = mask_head_ref(x, mask_encoding, params)
    assert out.shape == (B, 1), out.shape
    assert jnp.allclose(out, out_ref, atol=1e-4, rtol=1e-4)

    # tiled path: tb=2048, grid=2, batch padding sliced off
    B2 = 2500
    x2 = jax.random.normal(kx, (B2, 1), jnp.float32)
    m2 = jax.random.normal(km, (B2, num_segments), jnp.float32)
    out2 = mask_head_forward(x2, m2, params)
    jax.block_until_ready(out2)
    ref2 = mask_head_ref(x2, m2, params)
    assert out2.shape == (B2, 1), out2.shape
    assert jnp.allclose(out2, ref2, atol=1e-4, rtol=1e-4)

    print("KERNEL_OK")
</pallas_src>

<mosaic_0001>
module attributes {stable_mosaic.version = 11 : i64} {
  func.func @mask_head_kernel(%arg0: i32, %arg1: memref<16x1xf32, #tpu.memory_space<vmem>>, %arg2: memref<16x10xf32, #tpu.memory_space<vmem>>, %arg3: memref<10x128xf32, #tpu.memory_space<vmem>>, %arg4: memref<128x128xf32, #tpu.memory_space<vmem>>, %arg5: memref<8x128xf32, #tpu.memory_space<vmem>>, %arg6: memref<16x1xf32, #tpu.memory_space<vmem>>) attributes {dimension_semantics = [#tpu.dimension_semantics<parallel>], iteration_bounds = array<i64: 1>, scalar_prefetch = 0 : i64, scratch_operands = 0 : i64, tpu.core_type = #tpu.core_type<tc>, window_params = [{transform_indices = @transform_0, window_bounds = array<i64: 16, 1>}, {transform_indices = @transform_1, window_bounds = array<i64: 16, 10>}, {pipeline_mode = #tpu.pipeline_mode<synchronous>, transform_indices = @transform_2, window_bounds = array<i64: 10, 128>}, {pipeline_mode = #tpu.pipeline_mode<synchronous>, transform_indices = @transform_3, window_bounds = array<i64: 128, 128>}, {pipeline_mode = #tpu.pipeline_mode<synchronous>, transform_indices = @transform_4, window_bounds = array<i64: 8, 128>}, {transform_indices = @transform_5, window_bounds = array<i64: 16, 1>}]} {
    %c0 = arith.constant 0 : index
    %c0_0 = arith.constant 0 : index
    %0 = vector.load %arg5[%c0, %c0_0] : memref<8x128xf32, #tpu.memory_space<vmem>>, vector<8x128xf32>
    %1 = vector.extract_strided_slice %0 {offsets = [0, 0], sizes = [1, 128], strides = [1, 1]} : vector<8x128xf32> to vector<1x128xf32>
    %2 = vector.extract_strided_slice %0 {offsets = [1, 0], sizes = [1, 128], strides = [1, 1]} : vector<8x128xf32> to vector<1x128xf32>
    %3 = vector.extract_strided_slice %0 {offsets = [2, 0], sizes = [1, 128], strides = [1, 1]} : vector<8x128xf32> to vector<1x128xf32>
    %4 = vector.extract_strided_slice %0 {offsets = [3, 0], sizes = [1, 128], strides = [1, 1]} : vector<8x128xf32> to vector<1x128xf32>
    %5 = vector.extract_strided_slice %0 {offsets = [4, 0], sizes = [1, 1], strides = [1, 1]} : vector<8x128xf32> to vector<1x1xf32>
    %c0_1 = arith.constant 0 : index
    %c0_2 = arith.constant 0 : index
    %6 = vector.load %arg1[%c0_1, %c0_2] : memref<16x1xf32, #tpu.memory_space<vmem>>, vector<16x1xf32>
    %c0_3 = arith.constant 0 : index
    %c0_4 = arith.constant 0 : index
    %7 = vector.load %arg2[%c0_3, %c0_4] : memref<16x10xf32, #tpu.memory_space<vmem>>, vector<16x10xf32>
    %8 = vector.broadcast %6 : vector<16x1xf32> to vector<16x128xf32>
    %9 = vector.broadcast %1 : vector<1x128xf32> to vector<16x128xf32>
    %10 = arith.mulf %8, %9 : vector<16x128xf32>
    %c0_5 = arith.constant 0 : index
    %c0_6 = arith.constant 0 : index
    %11 = vector.load %arg3[%c0_5, %c0_6] : memref<10x128xf32, #tpu.memory_space<vmem>>, vector<10x128xf32>
    %cst = arith.constant dense<0.000000e+00> : vector<16x128xf32>
    %12 = tpu.matmul %7, %11, %cst {dimension_numbers = #tpu.dot_dimension_numbers<[1], [0], [0], [1], [0, 0, 1, 1], [], []>} : vector<16x10xf32>, vector<10x128xf32>, vector<16x128xf32> -> vector<16x128xf32>
    %13 = arith.addf %10, %12 : vector<16x128xf32>
    %14 = vector.broadcast %2 : vector<1x128xf32> to vector<16x128xf32>
    %15 = arith.addf %13, %14 : vector<16x128xf32>
    %cst_7 = arith.constant 0.000000e+00 : f32
    %16 = vector.broadcast %cst_7 : f32 to vector<16x128xf32>
    %17 = arith.maximumf %15, %16 : vector<16x128xf32>
    %c0_8 = arith.constant 0 : index
    %c0_9 = arith.constant 0 : index
    %18 = vector.load %arg4[%c0_8, %c0_9] : memref<128x128xf32, #tpu.memory_space<vmem>>, vector<128x128xf32>
    %cst_10 = arith.constant dense<0.000000e+00> : vector<16x128xf32>
    %19 = tpu.matmul %17, %18, %cst_10 {dimension_numbers = #tpu.dot_dimension_numbers<[1], [0], [0], [1], [0, 0, 1, 1], [], []>} : vector<16x128xf32>, vector<128x128xf32>, vector<16x128xf32> -> vector<16x128xf32>
    %20 = vector.broadcast %3 : vector<1x128xf32> to vector<16x128xf32>
    %21 = arith.addf %19, %20 : vector<16x128xf32>
    %cst_11 = arith.constant 0.000000e+00 : f32
    %22 = vector.broadcast %cst_11 : f32 to vector<16x128xf32>
    %23 = arith.maximumf %21, %22 : vector<16x128xf32>
    %24 = vector.broadcast %4 : vector<1x128xf32> to vector<16x128xf32>
    %25 = arith.mulf %23, %24 : vector<16x128xf32>
    %cst_12 = arith.constant dense<0.000000e+00> : vector<16xf32>
    %26 = vector.multi_reduction <add>, %25, %cst_12 [1] : vector<16x128xf32> to vector<16xf32>
    %27 = vector.shape_cast %26 : vector<16xf32> to vector<16x1xf32>
    %28 = vector.broadcast %5 : vector<1x1xf32> to vector<16x1xf32>
    %29 = arith.addf %27, %28 : vector<16x1xf32>
    %30 = math.tanh %29 : vector<16x1xf32>
    %c0_13 = arith.constant 0 : index
    %c0_14 = arith.constant 0 : index
    %31 = vector.load %arg6[%c0_13, %c0_14] : memref<16x1xf32, #tpu.memory_space<vmem>>, vector<16x1xf32>
    tpu.vector_store %arg6[%c0_13, %c0_14], %30 {strides = array<i32>} : memref<16x1xf32, #tpu.memory_space<vmem>>, vector<16x1xf32>,
    return
  }
  func.func @transform_0(%arg0: i32) -> (i32, i32) {
    %c0_i32 = arith.constant 0 : i32
    %c0_i32_0 = arith.constant 0 : i32
    return %arg0, %c0_i32 : i32, i32
  }
  func.func @transform_1(%arg0: i32) -> (i32, i32) {
    %c0_i32 = arith.constant 0 : i32
    %c0_i32_0 = arith.constant 0 : i32
    return %arg0, %c0_i32 : i32, i32
  }
  func.func @transform_2(%arg0: i32) -> (i32, i32) {
    %c0_i32 = arith.constant 0 : i32
    %c0_i32_0 = arith.constant 0 : i32
    %c0_i32_1 = arith.constant 0 : i32
    return %c0_i32, %c0_i32_0 : i32, i32
  }
  func.func @transform_3(%arg0: i32) -> (i32, i32) {
    %c0_i32 = arith.constant 0 : i32
    %c0_i32_0 = arith.constant 0 : i32
    %c0_i32_1 = arith.constant 0 : i32
    return %c0_i32, %c0_i32_0 : i32, i32
  }
  func.func @transform_4(%arg0: i32) -> (i32, i32) {
    %c0_i32 = arith.constant 0 : i32
    %c0_i32_0 = arith.constant 0 : i32
    %c0_i32_1 = arith.constant 0 : i32
    return %c0_i32, %c0_i32_0 : i32, i32
  }
  func.func @transform_5(%arg0: i32) -> (i32, i32) {
    %c0_i32 = arith.constant 0 : i32
    %c0_i32_0 = arith.constant 0 : i32
    return %arg0, %c0_i32 : i32, i32
  }
}

</mosaic_0001>

<bundles_post_ra>
// kernel: mask_head_forward.1
= control target key start
LH: loop header
LB: loop body
LE: loop exit
PB: predicated region body
PF: predicated region fallthrough
CT: control target
= control target key end

     0   :  { %10 = vsyncpa [#allocation3], 0  ;;  %s509_s0 = inlined_call_operand.vmem [shape: f32[16,1], index: 0, kind: input, shape index: {}]   ;;  %s510_s1 = inlined_call_operand.vmem [shape: f32[16,10], index: 1, kind: input, shape index: {}]   ;;  %s511_s2 = inlined_call_operand.hbm [shape: f32[10,128], index: 2, kind: input, shape index: {}]   ;;  %s512_s3 = inlined_call_operand.hbm [shape: f32[128,128], index: 3, kind: input, shape index: {}]   ;;  %s513_s4 = inlined_call_operand.hbm [shape: f32[8,128], index: 4, kind: input, shape index: {}]   ;;  %s514_s5 = inlined_call_operand.vmem [shape: f32[16,1], index: 5, kind: output, shape index: {}]  }
   0x1   :  { %11 = vsyncpa [#allocation5], 0  ;;  %s444_s18 = smov [#allocation4]   ;;  %s445_s20 = smov [#allocation2]  }
   0x2   :  { %s33_s19 = sshll.u32 %s444_s18, 4  ;;  %s21_s21 = sshll.u32 %s445_s20, 4  ;;  %s34_s19 = int_to_ptr.vmem [resolvable:$true] %s33_s19  ;;  %s22_s21 = int_to_ptr.vmem [resolvable:$true] %s21_s21 }
   0x3   :  { %s388_s22 = scalar_lea.vmem %s34_s19, 2048  ;;  %p393_p1 = scmp.lt.s32.totalorder %s34_s19, %s34_s19 }
   0x4   :  { %p389_p0 = scmp.ne.s32.totalorder %s34_s19, %s388_s22  ;;  %p394_p2 = scmp.lt.s32.totalorder %s388_s22, %s388_s22 }
   0x6   :  { %p395_p3 = por %p394_p2, %p393_p1 }
   0x8   :  { %p396_p4 = pnand %p395_p3, %p389_p0 }
   0xa   :  { %399 = shalt.err (!%p396_p4)
}
   0xb   :  { %s446_s23 = smov 128   ;;  %s447_s24 = smov 8  }
   0xc   :  { %39 = dma.hbm_to_vmem [thread:$0]  %s512_s3, 2048, %s34_s19, [#allocation5], %s446_s23, %s446_s23, %s447_s24  }
   0xd   :  { %s408_s27 = scalar_lea.vmem %s22_s21, 256  ;;  %p413_p6 = scmp.lt.s32.totalorder %s22_s21, %s22_s21 }
   0xe   :  { %p409_p5 = scmp.ne.s32.totalorder %s22_s21, %s408_s27  ;;  %p414_p7 = scmp.lt.s32.totalorder %s408_s27, %s408_s27 }
  0x10   :  { %p415_p8 = por %p414_p7, %p413_p6 }
  0x12   :  { %p416_p9 = pnand %p415_p8, %p409_p5 }
  0x14   :  { %419 = shalt.err (!%p416_p9)
}
  0x15   :  { %27 = dma.hbm_to_vmem [thread:$0]  %s511_s2, 256, %s22_s21, [#allocation3], %s446_s23, %s446_s23, %s447_s24  }
  0x16   :  { %s448_s30 = smov [#allocation6]  }
  0x17   :  { %s46_s6 = sshll.u32 %s448_s30, 4  ;;  %s47_s6 = int_to_ptr.vmem [resolvable:$true] %s46_s6 }
  0x18   :  { %s428_s7 = scalar_lea.vmem %s47_s6, 128  ;;  %p433_p11 = scmp.lt.s32.totalorder %s47_s6, %s47_s6 }
  0x19   :  { %p429_p10 = scmp.ne.s32.totalorder %s47_s6, %s428_s7  ;;  %p434_p12 = scmp.lt.s32.totalorder %s428_s7, %s428_s7 }
  0x1b   :  { %p435_p13 = por %p434_p12, %p433_p11 }
  0x1d   :  { %p436_p0 = pnand %p435_p13, %p429_p10 }
  0x1f   :  { %439 = shalt.err (!%p436_p0)
}
  0x20   :  { %49 = dma.hbm_to_vmem [thread:$0]  %s513_s4, 128, %s47_s6, [#allocation5]  }
  0x21   :  { %440 = dma.done.wait [#allocation3], 256  }
  0x22   :  { %441 = vsyncadd [#allocation3], 4294967040 }
  0x23   :  { %442 = dma.done.wait [#allocation5], 2176  }
  0x24   :  { %443 = vsyncadd [#allocation5], 4294965120  ;;  %v449_v0 = vmov 0   ;;  %vm89_vm0 = vcmask 1041408   ;;  %vm82_vm1 = vcmask 80896   ;;  %v80_v2 = vld [vmem:[#allocation2] sm:$0xff]  ;;  %v74_v23 = vlaneseq }
  0x25   :  { %375 = vset.pattern.permute.xlu0 %v449_v0  ;;  %v81_v1 = vld [vmem:[#allocation2 + $0x8] sm:$0x3]  ;;  %v62_v3 = vld [vmem:[%s510_s1] sm:$0xff]  ;;  %v191_v9 = vld [vmem:[#allocation4 + $0x68] sm:$0xff]  ;;  %vm293_vm2 = vcmask 7168  }
  0x26   :  { %327 = vmatprep.subr.msk.mxu0 %vm89_vm0, %v81_v1  ;;  %331 = vmatprep.mubr.msk.f32.mxu0 %vm82_vm1, %v62_v3  ;;  %v60_v4 = vld [vmem:[%s509_s0] sm:$0xff]  ;;  %v63_v5 = vld [vmem:[%s510_s1 + $0x8] sm:$0xff]  ;;  %v190_v10 = vld [vmem:[#allocation4 + $0x60] sm:$0xff]  ;;  %v75_v24 = vshrl.u32 %v74_v23, 7 }
  0x27   :  { %328 = vmatpush3.msk.msra.mxu0 %vm89_vm0, %v81_v1  ;;  %66 = vperm.xlu0 %375, %v60_v4   ;;  %v193_v6 = vld [vmem:[#allocation4 + $0x78] sm:$0xff]  ;;  %v192_v7 = vld [vmem:[#allocation4 + $0x70] sm:$0xff]  ;;  %v187_v13 = vld [vmem:[#allocation4 + $0x48] sm:$0xff] }
  0x28   :  { %329 = vmatprep.subr.mxu0 %v80_v2  ;;  %v61_v8 = vld [vmem:[%s509_s0 + $0x8] sm:$0xff]  ;;  %334 = vmatprep.subr.mxu1 %v193_v6  ;;  %v188_v12 = vld [vmem:[#allocation4 + $0x50] sm:$0xff]  ;;  %v186_v14 = vld [vmem:[#allocation4 + $0x40] sm:$0xff]  ;;  %v76_v26 = vsub.s32 0, %v75_v24  ;;  %v172_v30 = vsub.s32 1, %v75_v24  ;;  %v196_v42 = vsub.s32 2, %v75_v24 }
  0x29   :  { %330 = vmatpush3.msra.mxu0 %v80_v2  ;;  %335 = vmatpush3.msra.mxu1 %v193_v6  ;;  %v189_v11 = vld [vmem:[#allocation4 + $0x58] sm:$0xff]  ;;  %v184_v16 = vld [vmem:[#allocation4 + $0x30] sm:$0xff]  ;;  %v183_v17 = vld [vmem:[#allocation4 + $0x28] sm:$0xff]  ;;  %v277_v45 = vsub.s32 3, %v75_v24  ;;  %v287_v54 = vsub.s32 4, %v75_v24 }
  0x2a   :  { %332 = vmatmul.mubr.msk.f32.vlgmr.msra.gmra.mxu0 %vm82_vm1, %v63_v5  ;;  %336 = vmatprep.subr.mxu1 %v192_v7  ;;  %v185_v15 = vld [vmem:[#allocation4 + $0x38] sm:$0xff]  ;;  %v182_v18 = vld [vmem:[#allocation4 + $0x20] sm:$0xff]  ;;  %v180_v20 = vld [vmem:[#allocation4 + $0x10] sm:$0xff] }
  0x2b   :  { %71 = vperm.xlu0 %375, %v61_v8   ;;  %337 = vmatpush3.msra.mxu1 %v192_v7  ;;  %v181_v19 = vld [vmem:[#allocation4 + $0x18] sm:$0xff]  ;;  %v179_v21 = vld [vmem:[#allocation4 + $0x8] sm:$0xff]  ;;  %v178_v22 = vld [vmem:[#allocation4] sm:$0xff] }
  0x2c   :  { %338 = vmatprep.subr.mxu1 %v191_v9  ;;  %v59_v27 = vld [vmem:[#allocation6] sm:$0xff] }
  0x2d   :  { %339 = vmatpush3.msra.mxu1 %v191_v9  ;;  %v77_v28 = vrot.slane %v59_v27, %v76_v26  ;;  %v173_v33 = vrot.slane %v59_v27, %v172_v30  ;;  %v197_v43 = vrot.slane %v59_v27, %v196_v42  ;;  %v278_v50 = vrot.slane %v59_v27, %v277_v45 }
  0x2e   :  { %340 = vmatprep.subr.mxu1 %v190_v10  ;;  %v288_v55 = vrot.slane %v59_v27, %v287_v54 }
  0x2f   :  { %341 = vmatpush3.msra.mxu1 %v190_v10 }
  0x30   :  { %342 = vmatprep.subr.mxu1 %v189_v11 }
  0x31   :  { %343 = vmatpush3.msra.mxu1 %v189_v11 }
  0x32   :  { %344 = vmatprep.subr.mxu1 %v188_v12 }
  0x33   :  { %345 = vmatpush3.msra.mxu1 %v188_v12 }
  0x34   :  { %346 = vmatprep.subr.mxu1 %v187_v13 }
  0x35   :  { %347 = vmatpush3.msra.mxu1 %v187_v13 }
  0x36   :  { %348 = vmatprep.subr.mxu1 %v186_v14 }
  0x37   :  { %349 = vmatpush3.msra.mxu1 %v186_v14 }
  0x38   :  { %350 = vmatprep.subr.mxu1 %v185_v15 }
  0x39   :  { %351 = vmatpush3.msra.mxu1 %v185_v15 }
  0x3a   :  { %352 = vmatprep.subr.mxu1 %v184_v16 }
  0x3b   :  { %353 = vmatpush3.msra.mxu1 %v184_v16 }
  0x3c   :  { %354 = vmatprep.subr.mxu1 %v183_v17 }
  0x3d   :  { %355 = vmatpush3.msra.mxu1 %v183_v17 }
  0x3e   :  { %356 = vmatprep.subr.mxu1 %v182_v18 }
  0x3f   :  { %357 = vmatpush3.msra.mxu1 %v182_v18 }
  0x40   :  { %358 = vmatprep.subr.mxu1 %v181_v19 }
  0x41   :  { %359 = vmatpush3.msra.mxu1 %v181_v19 }
  0x42   :  { %360 = vmatprep.subr.mxu1 %v180_v20 }
  0x43   :  { %361 = vmatpush3.msra.mxu1 %v180_v20 }
  0x44   :  { %362 = vmatprep.subr.mxu1 %v179_v21 }
  0x45   :  { %363 = vmatpush3.msra.mxu1 %v179_v21 }
  0x46   :  { %364 = vmatprep.subr.mxu1 %v178_v22 }
  0x47   :  { %365 = vmatpush3.msra.mxu1 %v178_v22 }
  0xa2   :  { %v67_v25 = vpop.permute.xlu0 %66 }
  0xa3   :  { %v78_v34 = vmul.f32 %v77_v28, %v67_v25 }
  0xa6   :  { %v72_v29 = vpop.permute.xlu0 %71 }
  0xa7   :  { %v79_v31 = vmul.f32 %v77_v28, %v72_v29 }
  0xea   :  { %v333_v32 = vpop.f32.mrf.mxu0 }
  0xeb   :  { %v169_v35 = vadd.f32 %v333_v32, %v79_v31 }
  0xec   :  { %v159_v36 = vpop.f32.mrf.mxu0 }
  0xed   :  { %v168_v37 = vadd.f32 %v159_v36, %v78_v34  ;;  %v175_v38 = vadd.f32 %v173_v33, %v169_v35 }
  0xef   :  { %v174_v39 = vadd.f32 %v173_v33, %v168_v37  ;;  %v177_v41 = vmax.f32 %v175_v38, 0.0 }
  0xf1   :  { %v176_v40 = vmax.f32 %v174_v39, 0.0 }
  0xf3   :  { %366 = vmatprep.mubr.f32.mxu1 %v176_v40 }
  0xf4   :  { %367 = vmatmul.mubr.f32.vlgmr.msra.gmra.mxu1 %v177_v41 }
 0x1b4   :  { %v368_v44 = vpop.f32.mrf.mxu1 }
 0x1b5   :  { %v270_v47 = vadd.f32 %v368_v44, %v197_v43 }
 0x1b6   :  { %v264_v46 = vpop.f32.mrf.mxu1 }
 0x1b7   :  { %v265_v48 = vadd.f32 %v264_v46, %v197_v43  ;;  %v274_v51 = vmax.f32 %v270_v47, 0.0 }
 0x1b9   :  { %v273_v49 = vmax.f32 %v265_v48, 0.0  ;;  %v280_v53 = vmul.f32 %v278_v50, %v274_v51 }
 0x1bb   :  { %v279_v52 = vmul.f32 %v278_v50, %v273_v49 }
 0x1bd   :  { %281 = vadd.xlane.f32.xlu1 %v279_v52 }
 0x1c1   :  { %283 = vadd.xlane.f32.xlu1 %v280_v53 }
 0x246   :  { %v282_v56 = vpop.xlane.xlu1 %281 }
 0x247   :  { %v289_v57 = vadd.f32 %v288_v55, %v282_v56 }
 0x249   :  { %376 = vtanh.f32 %v289_v57 }
 0x24a   :  { %v284_v58 = vpop.xlane.xlu1 %283 }
 0x24b   :  { %v290_v59 = vadd.f32 %v288_v55, %v284_v58 }
 0x24d   :  { %378 = vtanh.f32 %v290_v59 }
 0x256   :  { %v377_v60 = vpop.eup %376 }
 0x257   :  { %294 = vst.msk [vmem:[%s514_s5] sm:$0xff] %vm293_vm2, %v377_v60 }
 0x25a   :  { %v379_v61 = vpop.eup %378 }
 0x25b   :  { %295 = vst.msk [vmem:[%s514_s5 + $0x8] sm:$0xff] %vm293_vm2, %v379_v61 }
 0x25c   :  { %300 = vsyncpa [#allocation3], 1 }
 0x25d   :  { %301 = vsyncpa [#allocation5], 1 }

</bundles_post_ra>
